<compile_context>
chip_gen: v7x
topology: tpu7x:2x2x1
jax: 0.10.0
libtpu: 0.0.40
codegen_flags: <defaults>
</compile_context>

<pallas_src>
import numpy as np
import jax
import jax.numpy as jnp
from jax.experimental import pallas as pl
from jax.experimental.pallas import tpu as pltpu

SLOWFAST_ALPHA = 4

_TARGET_INFLIGHT = 8   # aim for ~8-16 concurrent DMA descriptors
_MAX_HW_SPLIT = 4      # max sub-copies per frame along the H*W axis
_SEM_POOL = 8          # modulo-indexed DMA semaphore pool size (upper bound)


def _torch_linspace_long(t: int, n: int) -> np.ndarray:
    """Replicates torch.linspace(0, t-1, n).long() exactly.

    torch.linspace (default float32 dtype) computes
        step   = (end - start) / (n - 1)
        out[i] = start + step * i            for i <  n // 2
        out[i] = end   - step * (n - 1 - i)  for i >= n // 2
    and .long() truncates toward zero (== floor here since values >= 0).
    """
    if n <= 0:
        return np.zeros((0,), dtype=np.int32)
    if n == 1:
        return np.zeros((1,), dtype=np.int32)
    start = np.float32(0.0)
    end = np.float32(t - 1)
    step = (end - start) / np.float32(n - 1)
    i = np.arange(n)
    lo = start + step * i.astype(np.float32)
    hi = end - step * (n - 1 - i).astype(np.float32)
    vals = np.where(i < n // 2, lo, hi)
    return vals.astype(np.int64).astype(np.int32)  # trunc toward zero


def _build_copy_plan(idx: np.ndarray, hw: int):
    """Static DMA descriptor plan: list of (src_t0, dst_t0, t_len, hw0, hw_len).

    * Contiguous (stride-1) index runs coalesce into one multi-frame copy.
    * If the descriptor count is below _TARGET_INFLIGHT, copies are split
      along the lane-dense hw axis into 128-aligned pieces so more DMAs are
      in flight concurrently.
    """
    n = len(idx)
    runs = []  # (src_start, dst_start, t_len)
    i = 0
    while i < n:
        j = i
        while j + 1 < n and int(idx[j + 1]) == int(idx[j]) + 1:
            j += 1
        runs.append((int(idx[i]), i, j - i + 1))
        i = j + 1

    split = 1
    if len(runs) < _TARGET_INFLIGHT and hw >= 2 * 128:
        want = -(-_TARGET_INFLIGHT // len(runs))  # ceil
        split = max(1, min(_MAX_HW_SPLIT, want, hw // 128))

    if split > 1:
        base = hw // split
        if base >= 128:
            base -= base % 128                    # lane-aligned pieces
        pieces = [(p * base, base) for p in range(split - 1)]
        pieces.append(((split - 1) * base, hw - (split - 1) * base))
    else:
        pieces = [(0, hw)]

    return [(s0, d0, ln, h0, hl) for (s0, d0, ln) in runs for (h0, hl) in pieces]


def _make_gather_kernel(plan, pool_size):
    """Kernel factory: all descriptor geometry is baked in as constants."""

    def kernel(frames_hbm, slow_hbm, copy_sems):
        hw = frames_hbm.shape[-1]
        copies = []
        for k, (s0, d0, ln, h0, hl) in enumerate(plan):  # static unroll
            if h0 == 0 and hl == hw:
                src = frames_hbm.at[:, pl.ds(s0, ln), :]
                dst = slow_hbm.at[:, pl.ds(d0, ln), :]
            else:
                src = frames_hbm.at[:, pl.ds(s0, ln), pl.ds(h0, hl)]
                dst = slow_hbm.at[:, pl.ds(d0, ln), pl.ds(h0, hl)]
            cp = pltpu.make_async_copy(src, dst, copy_sems.at[k % pool_size])
            cp.start()                                   # all DMAs in flight
            copies.append(cp)
        for cp in copies:                                # then drain
            cp.wait()

    return kernel


def pack_pathway(frames: jax.Array):
    """JAX/Pallas equivalent of PackPathway.forward.

    frames: (C, T, H, W)
    returns [slow_pathway (C, T // alpha, H, W), fast_pathway (C, T, H, W)]
    """
    C, T, H, W = frames.shape
    n_slow = T // SLOWFAST_ALPHA
    fast = frames                                        # identity pathway

    if n_slow == 0:                                      # degenerate: T < alpha
        return [jnp.zeros((C, 0, H, W), frames.dtype), fast]

    idx = _torch_linspace_long(T, n_slow)                # static, host-side
    hw = H * W
    flat = frames.reshape(C, T, hw)                      # lane-dense last dim
    plan = _build_copy_plan(idx, hw)
    pool = min(len(plan), _SEM_POOL)
    itemsize = np.dtype(frames.dtype).itemsize

    slow_flat = pl.pallas_call(
        _make_gather_kernel(plan, pool),
        out_shape=jax.ShapeDtypeStruct((C, n_slow, hw), frames.dtype),
        in_specs=[pl.BlockSpec(memory_space=pl.ANY)],    # raw HBM ref
        out_specs=pl.BlockSpec(memory_space=pl.ANY),     # raw HBM ref
        scratch_shapes=[pltpu.SemaphoreType.DMA((pool,))],
        # Pure memory traffic: read + write n_slow frames.
        cost_estimate=pl.CostEstimate(
            flops=0,
            transcendentals=0,
            bytes_accessed=2 * C * n_slow * hw * itemsize,
        ),
    )(flat)

    slow = slow_flat.reshape(C, n_slow, H, W)
    return [slow, fast]


if __name__ == "__main__":
    key = jax.random.PRNGKey(0)
    # Small shapes: C=4 channels, T=8 frames, H=W=16 spatial.
    C, T, H, W = 4, 8, 16, 16
    frames = jax.random.normal(key, (C, T, H, W), dtype=jnp.float32)

    slow, fast = pack_pathway(frames)
    jax.block_until_ready(slow)
    jax.block_until_ready(fast)

    # Reference: plain JAX gather with torch-equivalent indices.
    n_slow = T // SLOWFAST_ALPHA
    ref_idx = _torch_linspace_long(T, n_slow)
    slow_ref = jnp.take(frames, jnp.asarray(ref_idx), axis=1)
    assert slow.shape == (C, n_slow, H, W)
    assert fast.shape == (C, T, H, W)
    np.testing.assert_allclose(np.asarray(slow), np.asarray(slow_ref))
    np.testing.assert_allclose(np.asarray(fast), np.asarray(frames))

    print("KERNEL_OK")
</pallas_src>

<mosaic_0001>
module attributes {stable_mosaic.version = 11 : i64} {
  func.func @kernel(%arg0: memref<4x8x256xf32, #tpu.memory_space<any>>, %arg1: memref<4x2x256xf32, #tpu.memory_space<any>>, %arg2: memref<4x!tpu.dma_semaphore, #tpu.memory_space<semaphore_mem>>) attributes {dimension_semantics = [], scalar_prefetch = 0 : i64, scratch_operands = 1 : i64, tpu.core_type = #tpu.core_type<tc>} {
    %c0_i32 = arith.constant 0 : i32
    %c0_i32_0 = arith.constant 0 : i32
    %c0_i32_1 = arith.constant 0 : i32
    %c0_i32_2 = arith.constant 0 : i32
    %0 = tpu.memref_slice %arg0[%c0_i32_0, %c0_i32_1, %c0_i32_2] : memref<4x8x256xf32, #tpu.memory_space<any>> -> memref<4x1x128xf32, #tpu.memory_space<any>>
    %c0_i32_3 = arith.constant 0 : i32
    %c0_i32_4 = arith.constant 0 : i32
    %c0_i32_5 = arith.constant 0 : i32
    %1 = tpu.memref_slice %arg1[%c0_i32_3, %c0_i32_4, %c0_i32_5] : memref<4x2x256xf32, #tpu.memory_space<any>> -> memref<4x1x128xf32, #tpu.memory_space<any>>
    %2 = tpu.memref_slice %arg2[%c0_i32] : memref<4x!tpu.dma_semaphore, #tpu.memory_space<semaphore_mem>> -> memref<1x!tpu.dma_semaphore, #tpu.memory_space<semaphore_mem>>
    %3 = tpu.memref_squeeze %2 : memref<1x!tpu.dma_semaphore, #tpu.memory_space<semaphore_mem>> -> memref<!tpu.dma_semaphore, #tpu.memory_space<semaphore_mem>>
    tpu.enqueue_dma source(%0 : memref<4x1x128xf32, #tpu.memory_space<any>>) target(%1 : memref<4x1x128xf32, #tpu.memory_space<any>>) target_semaphore(%3 : memref<!tpu.dma_semaphore, #tpu.memory_space<semaphore_mem>>)
    %c1_i32 = arith.constant 1 : i32
    %c0_i32_6 = arith.constant 0 : i32
    %c0_i32_7 = arith.constant 0 : i32
    %c128_i32 = arith.constant 128 : i32
    %4 = tpu.memref_slice %arg0[%c0_i32_6, %c0_i32_7, %c128_i32] : memref<4x8x256xf32, #tpu.memory_space<any>> -> memref<4x1x128xf32, #tpu.memory_space<any>>
    %c0_i32_8 = arith.constant 0 : i32
    %c0_i32_9 = arith.constant 0 : i32
    %c128_i32_10 = arith.constant 128 : i32
    %5 = tpu.memref_slice %arg1[%c0_i32_8, %c0_i32_9, %c128_i32_10] : memref<4x2x256xf32, #tpu.memory_space<any>> -> memref<4x1x128xf32, #tpu.memory_space<any>>
    %6 = tpu.memref_slice %arg2[%c1_i32] : memref<4x!tpu.dma_semaphore, #tpu.memory_space<semaphore_mem>> -> memref<1x!tpu.dma_semaphore, #tpu.memory_space<semaphore_mem>>
    %7 = tpu.memref_squeeze %6 : memref<1x!tpu.dma_semaphore, #tpu.memory_space<semaphore_mem>> -> memref<!tpu.dma_semaphore, #tpu.memory_space<semaphore_mem>>
    tpu.enqueue_dma source(%4 : memref<4x1x128xf32, #tpu.memory_space<any>>) target(%5 : memref<4x1x128xf32, #tpu.memory_space<any>>) target_semaphore(%7 : memref<!tpu.dma_semaphore, #tpu.memory_space<semaphore_mem>>)
    %c2_i32 = arith.constant 2 : i32
    %c0_i32_11 = arith.constant 0 : i32
    %c7_i32 = arith.constant 7 : i32
    %c0_i32_12 = arith.constant 0 : i32
    %8 = tpu.memref_slice %arg0[%c0_i32_11, %c7_i32, %c0_i32_12] : memref<4x8x256xf32, #tpu.memory_space<any>> -> memref<4x1x128xf32, #tpu.memory_space<any>>
    %c0_i32_13 = arith.constant 0 : i32
    %c1_i32_14 = arith.constant 1 : i32
    %c0_i32_15 = arith.constant 0 : i32
    %9 = tpu.memref_slice %arg1[%c0_i32_13, %c1_i32_14, %c0_i32_15] : memref<4x2x256xf32, #tpu.memory_space<any>> -> memref<4x1x128xf32, #tpu.memory_space<any>>
    %10 = tpu.memref_slice %arg2[%c2_i32] : memref<4x!tpu.dma_semaphore, #tpu.memory_space<semaphore_mem>> -> memref<1x!tpu.dma_semaphore, #tpu.memory_space<semaphore_mem>>
    %11 = tpu.memref_squeeze %10 : memref<1x!tpu.dma_semaphore, #tpu.memory_space<semaphore_mem>> -> memref<!tpu.dma_semaphore, #tpu.memory_space<semaphore_mem>>
    tpu.enqueue_dma source(%8 : memref<4x1x128xf32, #tpu.memory_space<any>>) target(%9 : memref<4x1x128xf32, #tpu.memory_space<any>>) target_semaphore(%11 : memref<!tpu.dma_semaphore, #tpu.memory_space<semaphore_mem>>)
    %c3_i32 = arith.constant 3 : i32
    %c0_i32_16 = arith.constant 0 : i32
    %c7_i32_17 = arith.constant 7 : i32
    %c128_i32_18 = arith.constant 128 : i32
    %12 = tpu.memref_slice %arg0[%c0_i32_16, %c7_i32_17, %c128_i32_18] : memref<4x8x256xf32, #tpu.memory_space<any>> -> memref<4x1x128xf32, #tpu.memory_space<any>>
    %c0_i32_19 = arith.constant 0 : i32
    %c1_i32_20 = arith.constant 1 : i32
    %c128_i32_21 = arith.constant 128 : i32
    %13 = tpu.memref_slice %arg1[%c0_i32_19, %c1_i32_20, %c128_i32_21] : memref<4x2x256xf32, #tpu.memory_space<any>> -> memref<4x1x128xf32, #tpu.memory_space<any>>
    %14 = tpu.memref_slice %arg2[%c3_i32] : memref<4x!tpu.dma_semaphore, #tpu.memory_space<semaphore_mem>> -> memref<1x!tpu.dma_semaphore, #tpu.memory_space<semaphore_mem>>
    %15 = tpu.memref_squeeze %14 : memref<1x!tpu.dma_semaphore, #tpu.memory_space<semaphore_mem>> -> memref<!tpu.dma_semaphore, #tpu.memory_space<semaphore_mem>>
    tpu.enqueue_dma source(%12 : memref<4x1x128xf32, #tpu.memory_space<any>>) target(%13 : memref<4x1x128xf32, #tpu.memory_space<any>>) target_semaphore(%15 : memref<!tpu.dma_semaphore, #tpu.memory_space<semaphore_mem>>)
    %c0_i32_22 = arith.constant 0 : i32
    %c0_i32_23 = arith.constant 0 : i32
    %c0_i32_24 = arith.constant 0 : i32
    %c0_i32_25 = arith.constant 0 : i32
    %16 = tpu.memref_slice %arg0[%c0_i32_23, %c0_i32_24, %c0_i32_25] : memref<4x8x256xf32, #tpu.memory_space<any>> -> memref<4x1x128xf32, #tpu.memory_space<any>>
    %c0_i32_26 = arith.constant 0 : i32
    %c0_i32_27 = arith.constant 0 : i32
    %c0_i32_28 = arith.constant 0 : i32
    %17 = tpu.memref_slice %arg1[%c0_i32_26, %c0_i32_27, %c0_i32_28] : memref<4x2x256xf32, #tpu.memory_space<any>> -> memref<4x1x128xf32, #tpu.memory_space<any>>
    %18 = tpu.memref_slice %arg2[%c0_i32_22] : memref<4x!tpu.dma_semaphore, #tpu.memory_space<semaphore_mem>> -> memref<1x!tpu.dma_semaphore, #tpu.memory_space<semaphore_mem>>
    %19 = tpu.memref_squeeze %18 : memref<1x!tpu.dma_semaphore, #tpu.memory_space<semaphore_mem>> -> memref<!tpu.dma_semaphore, #tpu.memory_space<semaphore_mem>>
    tpu.wait_dma2 semaphore(%19 : memref<!tpu.dma_semaphore, #tpu.memory_space<semaphore_mem>>) src(%16 : memref<4x1x128xf32, #tpu.memory_space<any>>) dst(%17 : memref<4x1x128xf32, #tpu.memory_space<any>>)
    %c1_i32_29 = arith.constant 1 : i32
    %c0_i32_30 = arith.constant 0 : i32
    %c0_i32_31 = arith.constant 0 : i32
    %c128_i32_32 = arith.constant 128 : i32
    %20 = tpu.memref_slice %arg0[%c0_i32_30, %c0_i32_31, %c128_i32_32] : memref<4x8x256xf32, #tpu.memory_space<any>> -> memref<4x1x128xf32, #tpu.memory_space<any>>
    %c0_i32_33 = arith.constant 0 : i32
    %c0_i32_34 = arith.constant 0 : i32
    %c128_i32_35 = arith.constant 128 : i32
    %21 = tpu.memref_slice %arg1[%c0_i32_33, %c0_i32_34, %c128_i32_35] : memref<4x2x256xf32, #tpu.memory_space<any>> -> memref<4x1x128xf32, #tpu.memory_space<any>>
    %22 = tpu.memref_slice %arg2[%c1_i32_29] : memref<4x!tpu.dma_semaphore, #tpu.memory_space<semaphore_mem>> -> memref<1x!tpu.dma_semaphore, #tpu.memory_space<semaphore_mem>>
    %23 = tpu.memref_squeeze %22 : memref<1x!tpu.dma_semaphore, #tpu.memory_space<semaphore_mem>> -> memref<!tpu.dma_semaphore, #tpu.memory_space<semaphore_mem>>
    tpu.wait_dma2 semaphore(%23 : memref<!tpu.dma_semaphore, #tpu.memory_space<semaphore_mem>>) src(%20 : memref<4x1x128xf32, #tpu.memory_space<any>>) dst(%21 : memref<4x1x128xf32, #tpu.memory_space<any>>)
    %c2_i32_36 = arith.constant 2 : i32
    %c0_i32_37 = arith.constant 0 : i32
    %c7_i32_38 = arith.constant 7 : i32
    %c0_i32_39 = arith.constant 0 : i32
    %24 = tpu.memref_slice %arg0[%c0_i32_37, %c7_i32_38, %c0_i32_39] : memref<4x8x256xf32, #tpu.memory_space<any>> -> memref<4x1x128xf32, #tpu.memory_space<any>>
    %c0_i32_40 = arith.constant 0 : i32
    %c1_i32_41 = arith.constant 1 : i32
    %c0_i32_42 = arith.constant 0 : i32
    %25 = tpu.memref_slice %arg1[%c0_i32_40, %c1_i32_41, %c0_i32_42] : memref<4x2x256xf32, #tpu.memory_space<any>> -> memref<4x1x128xf32, #tpu.memory_space<any>>
    %26 = tpu.memref_slice %arg2[%c2_i32_36] : memref<4x!tpu.dma_semaphore, #tpu.memory_space<semaphore_mem>> -> memref<1x!tpu.dma_semaphore, #tpu.memory_space<semaphore_mem>>
    %27 = tpu.memref_squeeze %26 : memref<1x!tpu.dma_semaphore, #tpu.memory_space<semaphore_mem>> -> memref<!tpu.dma_semaphore, #tpu.memory_space<semaphore_mem>>
    tpu.wait_dma2 semaphore(%27 : memref<!tpu.dma_semaphore, #tpu.memory_space<semaphore_mem>>) src(%24 : memref<4x1x128xf32, #tpu.memory_space<any>>) dst(%25 : memref<4x1x128xf32, #tpu.memory_space<any>>)
    %c3_i32_43 = arith.constant 3 : i32
    %c0_i32_44 = arith.constant 0 : i32
    %c7_i32_45 = arith.constant 7 : i32
    %c128_i32_46 = arith.constant 128 : i32
    %28 = tpu.memref_slice %arg0[%c0_i32_44, %c7_i32_45, %c128_i32_46] : memref<4x8x256xf32, #tpu.memory_space<any>> -> memref<4x1x128xf32, #tpu.memory_space<any>>
    %c0_i32_47 = arith.constant 0 : i32
    %c1_i32_48 = arith.constant 1 : i32
    %c128_i32_49 = arith.constant 128 : i32
    %29 = tpu.memref_slice %arg1[%c0_i32_47, %c1_i32_48, %c128_i32_49] : memref<4x2x256xf32, #tpu.memory_space<any>> -> memref<4x1x128xf32, #tpu.memory_space<any>>
    %30 = tpu.memref_slice %arg2[%c3_i32_43] : memref<4x!tpu.dma_semaphore, #tpu.memory_space<semaphore_mem>> -> memref<1x!tpu.dma_semaphore, #tpu.memory_space<semaphore_mem>>
    %31 = tpu.memref_squeeze %30 : memref<1x!tpu.dma_semaphore, #tpu.memory_space<semaphore_mem>> -> memref<!tpu.dma_semaphore, #tpu.memory_space<semaphore_mem>>
    tpu.wait_dma2 semaphore(%31 : memref<!tpu.dma_semaphore, #tpu.memory_space<semaphore_mem>>) src(%28 : memref<4x1x128xf32, #tpu.memory_space<any>>) dst(%29 : memref<4x1x128xf32, #tpu.memory_space<any>>)
    return
  }
}

</mosaic_0001>

<bundles_post_ra>
// kernel: tpu_custom_call.1
= control target key start
LH: loop header
LB: loop body
LE: loop exit
PB: predicated region body
PF: predicated region fallthrough
CT: control target
= control target key end

     0   :  { %s152_s6 = smov 256   ;;  %s153_s7 = smov 64   ;;  %s202_s0 = inlined_call_operand.hbm [shape: f32[4,8,256], index: 0, kind: input, shape index: {}]   ;;  %s203_s1 = inlined_call_operand.hbm [shape: f32[4,2,256], index: 1, kind: output, shape index: {}]  }
   0x1   :  { %18 = sst [smem:[#allocation4]] %s152_s6  ;;  %s154_s8 = smov 1  }
   0x2   :  { %20 = sst [smem:[#allocation4 + $0x1]] %s153_s7  ;;  %s25_s11 = scalar_lea.hbm %s202_s0, 128 }
   0x3   :  { %22 = sst [smem:[#allocation4 + $0x2]] %s154_s8  ;;  %s155_s12 = smov [#allocation2]  }
   0x4   :  { %s156_s13 = smov [#allocation3]   ;;  %s157_s14 = smov 0  }
   0x5   :  { %24 = dma.general %s202_s0, 64, %s203_s1, %s155_s12, %s156_s13, [#allocation4], %s157_s14, 0  }
   0x6   :  { %40 = sst [smem:[#allocation6]] %s152_s6  ;;  %s26_s21 = scalar_lea.hbm %s203_s1, 32 }
   0x7   :  { %42 = sst [smem:[#allocation6 + $0x1]] %s153_s7  ;;  %s158_s22 = smov [#allocation2 + $0x1]  }
   0x8   :  { %44 = sst [smem:[#allocation6 + $0x2]] %s154_s8  ;;  %s159_s23 = smov [#allocation5]  }
   0x9   :  { %46 = dma.general %s25_s11, 64, %s26_s21, %s158_s22, %s159_s23, [#allocation6], %s157_s14, 0  }
   0xa   :  { %62 = sst [smem:[#allocation8]] %s152_s6  ;;  %s47_s26 = scalar_lea.hbm %s202_s0, 112 }
   0xb   :  { %64 = sst [smem:[#allocation8 + $0x1]] %s153_s7  ;;  %s48_s29 = scalar_lea.hbm %s203_s1, 16 }
   0xc   :  { %66 = sst [smem:[#allocation8 + $0x2]] %s154_s8  ;;  %s69_s3 = scalar_lea.hbm %s202_s0, 240 }
   0xd   :  { %s160_s4 = smov [#allocation2 + $0x2]   ;;  %s161_s5 = smov [#allocation7]  }
   0xe   :  { %68 = dma.general %s47_s26, 64, %s48_s29, %s160_s4, %s161_s5, [#allocation8], %s157_s14, 0  }
   0xf   :  { %84 = sst [smem:[#allocation10]] %s152_s6  ;;  %s70_s11 = scalar_lea.hbm %s203_s1, 48 }
  0x10   :  { %86 = sst [smem:[#allocation10 + $0x1]] %s153_s7  ;;  %s162_s12 = smov [#allocation2 + $0x3]  }
  0x11   :  { %88 = sst [smem:[#allocation10 + $0x2]] %s154_s8  ;;  %s163_s13 = smov [#allocation9]  }
  0x12   :  { %90 = dma.general %s69_s3, 64, %s70_s11, %s162_s12, %s163_s13, [#allocation10], %s157_s14, 0  }
  0x13   :  { %144 = dma.done.wait [#allocation2], 64 }
  0x14   :  { %145 = vsyncadd [#allocation2], 4294967232 }
  0x15   :  { %146 = dma.done.wait [#allocation2 + $0x1], 64 }
  0x16   :  { %147 = vsyncadd [#allocation2 + $0x1], 4294967232 }
  0x17   :  { %148 = dma.done.wait [#allocation2 + $0x2], 64 }
  0x18   :  { %149 = vsyncadd [#allocation2 + $0x2], 4294967232 }
  0x19   :  { %150 = dma.done.wait [#allocation2 + $0x3], 64 }
  0x1a   :  { %151 = vsyncadd [#allocation2 + $0x3], 4294967232 }
  0x1b   :  { %101 = vsyncmov [#allocation2] }
  0x1e   :  { %s102_s0 = vpop.sfrf %101 }
  0x1f   :  { %p128_p0 = scmp.ne.s32.totalorder %s102_s0, 0 }
  0x21   :  { %106 = shalt.err (%p128_p0)  }
  0x22   :  { %108 = vsyncmov [#allocation2 + $0x1] }
  0x25   :  { %s109_s6 = vpop.sfrf %108 }
  0x26   :  { %p129_p1 = scmp.ne.s32.totalorder %s109_s6, 0 }
  0x28   :  { %113 = shalt.err (%p129_p1)  }
  0x29   :  { %115 = vsyncmov [#allocation2 + $0x2] }
  0x2c   :  { %s116_s1 = vpop.sfrf %115 }
  0x2d   :  { %p130_p2 = scmp.ne.s32.totalorder %s116_s1, 0 }
  0x2f   :  { %120 = shalt.err (%p130_p2)  }
  0x30   :  { %122 = vsyncmov [#allocation2 + $0x3] }
  0x33   :  { %s123_s7 = vpop.sfrf %122 }
  0x34   :  { %p131_p3 = scmp.ne.s32.totalorder %s123_s7, 0 }
  0x36   :  { %127 = shalt.err (%p131_p3)  }

</bundles_post_ra>
